<compile_context>
chip_gen: v6e
topology: v6e:2x2x1
jax: 0.10.0
libtpu: 0.0.40
codegen_flags: <defaults>
</compile_context>

<pallas_src>
import jax
import jax.numpy as jnp
from jax.experimental import pallas as pl
from jax.experimental.pallas import tpu as pltpu


def _ceil_div(a, b):
    return -(-a // b)


def _vmem_capacity_bytes():
    try:
        info = pltpu.get_tpu_info()
    except Exception:
        return 64 << 20
    for name in ("vmem_capacity_bytes", "vmem_bytes", "vmem_size_bytes"):
        v = getattr(info, name, None)
        if isinstance(v, int) and v > 0:
            return v
    return 64 << 20  # conservative (v7x-sized) fallback


def _make_root_kernel(group_cins, cout, residual, bn):
    """Kernel for fixed per-group channel counts / batch block / residual flag."""
    n_groups = len(group_cins)

    def kernel(*refs):
        x_refs = refs[:n_groups]                 # each (bn, gci, tm), input dtype
        w_refs = refs[n_groups:2 * n_groups]     # each (cout, gci), input dtype
        b_ref = refs[2 * n_groups]               # (cout, 1) f32
        o_ref = refs[2 * n_groups + 1]           # (bn, cout, tm)

        for b in range(bn):                      # static unroll, bn is small
            acc = None
            for j in range(n_groups):
                xj = x_refs[j][b]                # (gci, tm) -- no eager f32 cast
                part = jnp.dot(w_refs[j][...], xj,
                               preferred_element_type=jnp.float32)
                acc = part if acc is None else acc + part
            y = acc + b_ref[...]                 # lane broadcast
            if residual:
                # re-read from VMEM after the dot-sum (bounds vreg pressure)
                y = y + x_refs[0][b, :cout, :].astype(jnp.float32)
            o_ref[b] = jnp.maximum(y, 0.0).astype(o_ref.dtype)

    return kernel


def root_forward(children, conv_w, bn_gamma, bn_beta, bn_mean, bn_var,
                 residual=True, eps=1e-5, max_tm=2048):
    """children: list of NCHW arrays. conv_w: (Cout, Cin_total, 1, 1)."""
    N, _, H, W = children[0].shape
    HW = H * W
    cins = [int(c.shape[1]) for c in children]
    Cin = sum(cins)
    Cout = int(conv_w.shape[0])
    assert int(conv_w.shape[1]) == Cin
    if residual:
        assert cins[0] == Cout, "residual needs children[0] channels == Cout"

    in_dtype = children[0].dtype
    itemsize = jnp.dtype(in_dtype).itemsize

    # Free reshapes: NCHW -> (N, C, H*W).
    xs = [c.reshape(N, ci, HW) for c, ci in zip(children, cins)]

    # --- Pre-combine tiny children so each DMA stream is >= one sublane tile.
    sublane_min = {4: 8, 2: 16, 1: 32}.get(itemsize, 8)
    groups, cur, cur_ci = [], [], 0
    for x, ci in zip(xs, cins):
        cur.append(x)
        cur_ci += ci
        if cur_ci >= sublane_min:
            groups.append((cur, cur_ci))
            cur, cur_ci = [], 0
    if cur:
        if groups:
            prev, prev_ci = groups[-1]
            groups[-1] = (prev + cur, prev_ci + cur_ci)
        else:
            groups.append((cur, cur_ci))
    gxs = [g[0][0] if len(g[0]) == 1 else jnp.concatenate(g[0], axis=1)
           for g in groups]
    gcins = [g[1] for g in groups]

    # --- Fold BN (inference) into the conv weight; pre-split per group.
    w2d = conv_w.reshape(Cout, Cin).astype(jnp.float32)
    scale = (bn_gamma.astype(jnp.float32) /
             jnp.sqrt(bn_var.astype(jnp.float32) + eps))
    w_folded = w2d * scale[:, None]                              # (Cout, Cin) f32
    bias = (bn_beta.astype(jnp.float32) -
            bn_mean.astype(jnp.float32) * scale).reshape(Cout, 1)
    w_groups, off = [], 0
    for gci in gcins:
        w_groups.append(w_folded[:, off:off + gci].astype(in_dtype))
        off += gci

    vmem_cap = _vmem_capacity_bytes()
    stream_budget = int(min(vmem_cap, 128 << 20) * 0.30)

    # --- Pixel tile: lane-dense multiple of 128, budget- and grid-aware.
    if HW <= 128:
        tm = HW                                   # full extent (always legal)
    else:
        tm_cap = max(128, (HW // 128) * 128)      # never exceed the array dim
        tm = max(128, (min(max_tm, tm_cap) // 128) * 128)
        while tm > 128 and 2 * (Cin + Cout) * tm * itemsize > stream_budget:
            tm -= 128
        # v7x megacore: keep >= ~4 parallel steps when we can afford it.
        while tm > 512 and N * _ceil_div(HW, tm) < 4:
            tm_next = max(512, ((tm // 2) // 128) * 128)
            if tm_next >= tm:
                break
            tm = tm_next
    num_hw_tiles = _ceil_div(HW, tm)              # ragged last block is OK

    # --- Batch block: amortize per-step overhead on small spatial levels.
    target_bytes = 512 * 1024
    min_steps = 4
    bn = 1
    for d in range(1, N + 1):
        if N % d:
            continue
        if 2 * (Cin + Cout) * d * tm * itemsize > stream_budget:
            break
        if d > 1 and (N // d) * num_hw_tiles < min_steps:
            break
        bn = d
        if (Cin + Cout) * d * tm * itemsize >= target_bytes:
            break

    grid = (N // bn, num_hw_tiles)
    kernel = _make_root_kernel(tuple(gcins), Cout, residual, bn)

    in_specs = [pl.BlockSpec((bn, gci, tm), lambda n, i: (n, 0, i))
                for gci in gcins]
    in_specs += [pl.BlockSpec((Cout, gci), lambda n, i: (0, 0))
                 for gci in gcins]
    in_specs.append(pl.BlockSpec((Cout, 1), lambda n, i: (0, 0)))
    out_spec = pl.BlockSpec((bn, Cout, tm), lambda n, i: (n, 0, i))

    # Explicit scoped-VMEM limit: double-buffered streams + constants + headroom.
    block_bytes = (Cin + Cout) * bn * tm * itemsize
    const_bytes = sum(int(w.size) * itemsize for w in w_groups) + Cout * 4
    vmem_limit = int(2 * (block_bytes + const_bytes) * 1.5) + (2 << 20)
    vmem_limit = max(vmem_limit, 32 << 20)
    vmem_limit = min(vmem_limit, int(vmem_cap * 0.9))

    flops = 2 * N * HW * Cin * Cout
    bytes_accessed = N * HW * (Cin + Cout) * itemsize + const_bytes

    out3d = pl.pallas_call(
        kernel,
        out_shape=jax.ShapeDtypeStruct((N, Cout, HW), in_dtype),
        grid_spec=pltpu.PrefetchScalarGridSpec(
            num_scalar_prefetch=0,
            grid=grid,
            in_specs=in_specs,
            out_specs=out_spec,
        ),
        compiler_params=pltpu.CompilerParams(
            dimension_semantics=("parallel", "parallel"),
            vmem_limit_bytes=vmem_limit),
        cost_estimate=pl.CostEstimate(flops=flops, transcendentals=0,
                                      bytes_accessed=bytes_accessed),
    )(*gxs, *w_groups, bias)

    return out3d.reshape(N, Cout, H, W)


def _reference(children, conv_w, gamma, beta, mean, var, residual, eps=1e-5):
    x = jnp.concatenate(children, axis=1)                          # NCHW
    w = conv_w.reshape(conv_w.shape[0], conv_w.shape[1])           # (Cout, Cin)
    y = jnp.einsum("nchw,oc->nohw", x, w)
    y = (y - mean[None, :, None, None]) / jnp.sqrt(var + eps)[None, :, None, None]
    y = y * gamma[None, :, None, None] + beta[None, :, None, None]
    if residual:
        y = y + children[0]
    return jnp.maximum(y, 0.0)


if __name__ == "__main__":
    key = jax.random.PRNGKey(0)
    k1, k2, k3, k4, k5, k6, k7, k8, k9 = jax.random.split(key, 9)

    # Root(in_channels=8, out_channels=4, kernel_size=1, residual=True)
    # two children, each NCHW (2, 4, 16, 16).
    N, H, Wsp = 2, 16, 16
    in_channels, out_channels = 8, 4
    c0 = jax.random.normal(k1, (N, 4, H, Wsp), dtype=jnp.float32)
    c1 = jax.random.normal(k2, (N, 4, H, Wsp), dtype=jnp.float32)

    conv_w = 0.1 * jax.random.normal(k3, (out_channels, in_channels, 1, 1),
                                     dtype=jnp.float32)
    bn_gamma = 1.0 + 0.1 * jax.random.normal(k4, (out_channels,), dtype=jnp.float32)
    bn_beta = 0.1 * jax.random.normal(k5, (out_channels,), dtype=jnp.float32)
    bn_mean = 0.05 * jax.random.normal(k6, (out_channels,), dtype=jnp.float32)
    bn_var = jnp.abs(1.0 + 0.1 * jax.random.normal(k7, (out_channels,),
                                                   dtype=jnp.float32))

    out = root_forward([c0, c1], conv_w, bn_gamma, bn_beta, bn_mean, bn_var,
                       residual=True)
    out = jax.block_until_ready(out)
    ref = _reference([c0, c1], conv_w, bn_gamma, bn_beta, bn_mean, bn_var,
                     residual=True)
    assert out.shape == (N, out_channels, H, Wsp)
    assert jnp.allclose(out, ref, atol=1e-4, rtol=1e-4), "mismatch (residual)"

    # residual=False variant (separate kernel, no zeros stream).
    out_nr = jax.block_until_ready(
        root_forward([c0, c1], conv_w, bn_gamma, bn_beta, bn_mean, bn_var,
                     residual=False))
    ref_nr = _reference([c0, c1], conv_w, bn_gamma, bn_beta, bn_mean, bn_var,
                        residual=False)
    assert jnp.allclose(out_nr, ref_nr, atol=1e-4, rtol=1e-4), "mismatch (no-res)"

    # Non-128-aligned H*W (14x14 = 196) exercising the ragged-last-block path.
    d0 = jax.random.normal(k8, (N, 4, 14, 14), dtype=jnp.float32)
    d1 = jax.random.normal(k9, (N, 4, 14, 14), dtype=jnp.float32)
    out_r = jax.block_until_ready(
        root_forward([d0, d1], conv_w, bn_gamma, bn_beta, bn_mean, bn_var,
                     residual=True))
    ref_r = _reference([d0, d1], conv_w, bn_gamma, bn_beta, bn_mean, bn_var,
                       residual=True)
    assert out_r.shape == (N, out_channels, 14, 14)
    assert jnp.allclose(out_r, ref_r, atol=1e-4, rtol=1e-4), "mismatch (ragged)"

    print("KERNEL_OK")
</pallas_src>

<mosaic_0001>
module attributes {stable_mosaic.version = 11 : i64} {
  func.func @kernel(%arg0: i32, %arg1: i32, %arg2: memref<1x8x256xf32, #tpu.memory_space<vmem>>, %arg3: memref<4x8xf32, #tpu.memory_space<vmem>>, %arg4: memref<4x1xf32, #tpu.memory_space<vmem>>, %arg5: memref<1x4x256xf32, #tpu.memory_space<vmem>>) attributes {dimension_semantics = [#tpu.dimension_semantics<parallel>, #tpu.dimension_semantics<parallel>], iteration_bounds = array<i64: 2, 1>, scalar_prefetch = 0 : i64, scratch_operands = 0 : i64, tpu.core_type = #tpu.core_type<tc>, window_params = [{transform_indices = @transform_0, window_bounds = array<i64: 1, 8, 256>}, {pipeline_mode = #tpu.pipeline_mode<synchronous>, transform_indices = @transform_1, window_bounds = array<i64: 4, 8>}, {pipeline_mode = #tpu.pipeline_mode<synchronous>, transform_indices = @transform_2, window_bounds = array<i64: 4, 1>}, {transform_indices = @transform_3, window_bounds = array<i64: 1, 4, 256>}]} {
    %c0 = arith.constant 0 : index
    %c0_0 = arith.constant 0 : index
    %c0_1 = arith.constant 0 : index
    %0 = vector.load %arg2[%c0, %c0_0, %c0_1] : memref<1x8x256xf32, #tpu.memory_space<vmem>>, vector<1x8x256xf32>
    %1 = vector.shape_cast %0 : vector<1x8x256xf32> to vector<8x256xf32>
    %c0_2 = arith.constant 0 : index
    %c0_3 = arith.constant 0 : index
    %2 = vector.load %arg3[%c0_2, %c0_3] : memref<4x8xf32, #tpu.memory_space<vmem>>, vector<4x8xf32>
    %cst = arith.constant dense<0.000000e+00> : vector<4x256xf32>
    %3 = tpu.matmul %2, %1, %cst {dimension_numbers = #tpu.dot_dimension_numbers<[1], [0], [0], [1], [0, 0, 1, 1], [], []>} : vector<4x8xf32>, vector<8x256xf32>, vector<4x256xf32> -> vector<4x256xf32>
    %c0_4 = arith.constant 0 : index
    %c0_5 = arith.constant 0 : index
    %4 = vector.load %arg4[%c0_4, %c0_5] : memref<4x1xf32, #tpu.memory_space<vmem>>, vector<4x1xf32>
    %5 = vector.broadcast %4 : vector<4x1xf32> to vector<4x256xf32>
    %6 = arith.addf %3, %5 : vector<4x256xf32>
    %c0_6 = arith.constant 0 : index
    %c0_7 = arith.constant 0 : index
    %c0_8 = arith.constant 0 : index
    %7 = vector.load %arg2[%c0_6, %c0_7, %c0_8] : memref<1x8x256xf32, #tpu.memory_space<vmem>>, vector<1x4x256xf32>
    %8 = vector.shape_cast %7 : vector<1x4x256xf32> to vector<4x256xf32>
    %9 = arith.addf %6, %8 : vector<4x256xf32>
    %cst_9 = arith.constant 0.000000e+00 : f32
    %10 = vector.broadcast %cst_9 : f32 to vector<4x256xf32>
    %11 = arith.maximumf %9, %10 : vector<4x256xf32>
    %c0_10 = arith.constant 0 : index
    %c0_11 = arith.constant 0 : index
    %c0_12 = arith.constant 0 : index
    %12 = vector.load %arg5[%c0_10, %c0_11, %c0_12] : memref<1x4x256xf32, #tpu.memory_space<vmem>>, vector<1x4x256xf32>
    %13 = vector.shape_cast %12 : vector<1x4x256xf32> to vector<4x256xf32>
    %14 = vector.shape_cast %11 : vector<4x256xf32> to vector<1x4x256xf32>
    tpu.vector_store %arg5[%c0_10, %c0_11, %c0_12], %14 {strides = array<i32>} : memref<1x4x256xf32, #tpu.memory_space<vmem>>, vector<1x4x256xf32>,
    return
  }
  func.func @transform_0(%arg0: i32, %arg1: i32) -> (i32, i32, i32) {
    %c0_i32 = arith.constant 0 : i32
    %c0_i32_0 = arith.constant 0 : i32
    return %arg0, %c0_i32, %arg1 : i32, i32, i32
  }
  func.func @transform_1(%arg0: i32, %arg1: i32) -> (i32, i32) {
    %c0_i32 = arith.constant 0 : i32
    %c0_i32_0 = arith.constant 0 : i32
    %c0_i32_1 = arith.constant 0 : i32
    return %c0_i32, %c0_i32_0 : i32, i32
  }
  func.func @transform_2(%arg0: i32, %arg1: i32) -> (i32, i32) {
    %c0_i32 = arith.constant 0 : i32
    %c0_i32_0 = arith.constant 0 : i32
    %c0_i32_1 = arith.constant 0 : i32
    return %c0_i32, %c0_i32_0 : i32, i32
  }
  func.func @transform_3(%arg0: i32, %arg1: i32) -> (i32, i32, i32) {
    %c0_i32 = arith.constant 0 : i32
    %c0_i32_0 = arith.constant 0 : i32
    return %arg0, %c0_i32, %arg1 : i32, i32, i32
  }
}

</mosaic_0001>

<bundles_post_ra>
// kernel: tpu_custom_call.1
= control target key start
LH: loop header
LB: loop body
LE: loop exit
PB: predicated region body
PF: predicated region fallthrough
CT: control target
= control target key end

     0   :  { %8 = vsyncpa [#allocation3], 0  ;;  %s761_s0 = inlined_call_operand.hbm [shape: f32[2,8,256], index: 0, kind: input, shape index: {}]   ;;  %s762_s1 = inlined_call_operand.vmem [shape: f32[4,8], index: 1, kind: input, shape index: {}]   ;;  %s763_s2 = inlined_call_operand.vmem [shape: f32[4,1], index: 2, kind: input, shape index: {}]   ;;  %s764_s3 = inlined_call_operand.hbm [shape: f32[2,4,256], index: 3, kind: output, shape index: {}]  }
   0x1   :  { %10 = vsyncpa [#allocation3 + $0x1], 0 }
   0x2   :  { %11 = vsyncpa [#allocation4], 0 }
   0x3   :  { %13 = vsyncpa [#allocation4 + $0x1], 0  ;;  %s620_s12 = smov 0   ;;  %s622_s13 = smov 0  }
   0x4   :  { %s624_s14 = smov 0   ;;  %s626_s15 = smov 0  }
   0x5   :  { %s628_s16 = smov 0   ;;  %s630_s17 = smov 0  }
   0x6 LB: > { %s403_s18 = sadd.s32 4294967295, %s594_s17   ;;  %s404_s19 = sadd.s32 4294967294, %s594_s17   ;;  %s594_s17 = sphi %s630_s17, %s19_s17   ;;  %s590_s16 = sphi %s628_s16, %s776_s16   ;;  %s586_s15 = sphi %s626_s15, %s775_s15   ;;  %s582_s14 = sphi %s624_s14, %s774_s14   ;;  %s578_s13 = sphi %s622_s13, %s773_s13   ;;  %s574_s12 = sphi %s620_s12, %s772_s12  }
   0x7   : > { %s31_s20 = sadd.s32 1, %s590_s16  ;;  %s40_s21 = sadd.s32 1, %s582_s14 }
   0x8   : > { %p33_p0 = scmp.ge.s32.totalorder %s31_s20, 2  ;;  %p47_p1 = scmp.ne.s32.totalorder %s582_s14, %s578_s13 }
   0x9   : > { %p48_p2 = scmp.eq.s32.totalorder %s594_s17, 0  ;;  %p53_p3 = scmp.ne.s32.totalorder %s578_s13, %s574_s12 }
   0xa   : > { %s778_s20 = smov (%p33_p0, %s31_s20), 0  ;;  %p54_p5 = scmp.eq.s32.totalorder %s403_s18, 0 }
   0xb   : > { %p661_p4 = por %p48_p2, %p47_p1  ;;  %s35_s23 = ssub.s32 %s590_s16, %s778_s20 }
   0xc   : > { %p121_p6 = scmp.eq.s32.totalorder %s403_s18, 1  ;;  %p38_p7 = scmp.eq.s32.totalorder %s35_s23, 0 }
   0xd   : > { %p667_p8 = por %p54_p5, %p53_p3  ;;  %p127_p10 = scmp.eq.s32.totalorder %s404_s19, 1 }
   0xe   : > { %p671_p9 = por %p121_p6, %p47_p1  ;;  %p433_p13 = scmp.lt.s32.totalorder %s594_s17, 2 }
   0xf   : > { %s676_s26 = scalar_select %p38_p7, %s582_s14, %s40_s21  }
  0x10   : > { %p678_p11 = por %p127_p10, %p53_p3  ;;  %s153_s28 = sand.u32 1, %s582_s14  }
  0x11   : > { %s407_s29 = sshll.u32 %s153_s28, 4  ;;  %s419_s30 = sshll.u32 %s590_s16, 8 }
  0x12   : > { %s768_s27 = scalar_select %p678_p11, 1, 0 }
  0x13   : > { %s165_s6 = scalar_lea.hbm %s761_s0, %s419_s30  ;;  %s157_s7 = scalar_lea.vmem [#allocation2], %s407_s29 }
  0x14   : > { %s167_s8 = sshll.u32 %s157_s7, 4  ;;  %p691_p0 = pnand %p433_p13, %p661_p4  ;;  %s168_s8 = int_to_ptr.vmem [resolvable:$true] %s167_s8 }
  0x15   : > { %p410_p1 = scmp.ge.s32.totalorder %s594_s17, 1  ;;  %p172_p2 = scmp.lt.s32.totalorder %s594_s17, 3 }
  0x16   : > { %s154_s10 = scalar_lea.sflag [#allocation3], %s153_s28  ;;  %p488_p3 = pneg %p691_p0 }
  0x17   : > { %s499_s11 = scalar_lea.vmem %s168_s8, 256  ;;  %s596_s18 = smov [#allocation2]  }
  0x18   : > { %p500_p5 = scmp.ne.s32.totalorder %s168_s8, %s499_s11  ;;  %s504_s19 = sshll.u32 %s596_s18, 4  ;;  %s505_s19 = int_to_ptr.vmem [resolvable:$false] %s504_s19 }
  0x19   : > { %s506_s21 = scalar_lea.vmem %s505_s19, 512  ;;  %p507_p10 = scmp.lt.s32.totalorder %s168_s8, %s505_s19 }
  0x1a   : > { %p502_p6 = pnand %p500_p5, %p488_p3  ;;  %p508_p12 = scmp.lt.s32.totalorder %s506_s21, %s499_s11 }
  0x1c   : > { %p503_p7 = pneg %p502_p6  ;;  %p509_p4 = por %p508_p12, %p507_p10 }
  0x1e   : > { %p510_p13 = pnand %p509_p4, %p503_p7 }
  0x20   : > { %513 = shalt.err (!%p510_p13)
}
  0x21   : > { %428 = dma.hbm_to_vmem [thread:$0]  (!%p691_p0), %s165_s6, 256, %s168_s8, %s154_s10  }
  0x22   : > { %p173_p11 = pnand %p410_p1, %p172_p2 }
  0x23   : > { %s706_s22 = sand.u32 (!%p173_p11), 1, %s578_s13  }
  0x24   : > { %176 = sbr.rel (%p173_p11) target bundleno = 262 (0x106), region = 32  ;;  %s411_s23 = sshll.u32 (!%p173_p11), %s706_s22, 4 }
  0x25   : > { %s179_s28 = scalar_lea.sflag (!%p173_p11), [#allocation3], %s706_s22  ;;  %s182_s29 = scalar_lea.vmem (!%p173_p11), [#allocation2], %s411_s23 }
  0x29   : > { %565 = dma.done.wait (%p667_p8), %s179_s28, 256  }
  0x2a   : > { %567 = vsyncadd (%p667_p8), %s179_s28, 4294967040  ;;  %v597_v0 = vmov 0.0   ;;  %v598_v1 = vmov 0   ;;  %v208_v2 = vld [vmem:[%s182_s29 + $0x8] sm:$0xff]  ;;  %v207_v3 = vld [vmem:[%s182_s29] sm:$0xff]  ;;  %vm216_vm0 = vcmask 64512  }
  0x2b   : > { %284 = vmatprep.mubr.f32.mxu0 %v597_v0  ;;  %485 = vset.pattern.permute.xlu0 %v598_v1  ;;  %v209_v4 = vld [vmem:[%s762_s1] sm:$0xf]  ;;  %s412_s24 = sshll.u32 %s706_s22, 3  ;;  %v292_v11 = vld [vmem:[%s182_s29 + $0x8] sm:$0xf]  ;;  %s420_s7 = sshll.u32 %s586_s15, 7 }
  0x2c   : > { %250 = vmatprep.subr.mxu0 %v208_v2  ;;  %v210_v5 = vld [vmem:[%s763_s2] sm:$0xf]  ;;  %s204_s8 = scalar_lea.vmem [#allocation5], %s412_s24  ;;  %s317_s18 = scalar_lea.hbm %s764_s3, %s420_s7 }
  0x2d   : > { %251 = vmatpush1.msra.mxu0 %v207_v3  ;;  %213 = vperm.xlu0 %485, %v210_v5   ;;  %v291_v8 = vld [vmem:[%s182_s29] sm:$0xf]  ;;  %s319_s9 = sshll.u32 %s204_s8, 4  ;;  %s303_s19 = scalar_lea.sflag [#allocation4], %s706_s22  ;;  %s320_s9 = int_to_ptr.vmem [resolvable:$true] %s319_s9 }
  0x2e   : > { %413 = vmatmul.mubr.msk.f32.vlgmr.msra.gmra.mxu0 %vm216_vm0, %v209_v4  ;;  %s514_s21 = scalar_lea.vmem %s320_s9, 128  ;;  %s599_s23 = smov [#allocation5]  }
  0x2f   : > { %p515_p8 = scmp.ne.s32.totalorder %s320_s9, %s514_s21  ;;  %s518_s28 = sshll.u32 %s599_s23, 4  ;;  %s519_s28 = int_to_ptr.vmem [resolvable:$false] %s518_s28 }
  0x30   : > { %s520_s15 = scalar_lea.vmem %s519_s28, 256  ;;  %p521_p0 = scmp.lt.s32.totalorder %s320_s9, %s519_s28 }
  0x31   : > { %p516_p11 = pnand %p515_p8, %p671_p9  ;;  %p522_p1 = scmp.lt.s32.totalorder %s520_s15, %s514_s21 }
  0x33   : > { %p517_p12 = pneg %p516_p11  ;;  %p523_p2 = por %p522_p1, %p521_p0 }
  0x35   : > { %p524_p3 = pnand %p523_p2, %p517_p12 }
  0xa8   : > { %v214_v6 = vpop.permute.xlu0 %213 }
  0xee   : > { %v286_v7 = vpop.f32.mrf.mxu0 }
  0xef   : > { %v287_v9 = vadd.f32 %v286_v7, %v214_v6 }
  0xf0   : > { %v288_v10 = vpop.f32.mrf.mxu0 }
  0xf1   : > { %v293_v12 = vadd.f32 %v291_v8, %v287_v9  ;;  %v289_v13 = vadd.f32 %v288_v10, %v214_v6 }
  0xf3   : > { %v294_v14 = vadd.f32 %v292_v11, %v289_v13  ;;  %v295_v15 = vmax.f32 %v293_v12, 0.0 }
  0xf5   : > { %v296_v16 = vmax.f32 %v294_v14, 0.0 }
  0xf7   : > { %v299_v17 = vcombine.low %v295_v15, %v296_v16 }
  0xf9   : > { %301 = vst [vmem:[%s204_s8] sm:$0xff] %v299_v17 }
  0xfa   : > { %527 = shalt.err (!%p524_p3)
}
  0xfb   : > { %s528_s29 = scalar_lea.hbm %s317_s18, 128  ;;  %s532_s4 = scalar_lea.hbm %s764_s3, 256 }
  0xfc   : > { %p529_p5 = scmp.ne.s32.totalorder %s317_s18, %s528_s29  ;;  %p533_p10 = scmp.lt.s32.totalorder %s317_s18, %s764_s3 }
  0xfd   : > { %p534_p4 = scmp.lt.s32.totalorder %s532_s4, %s528_s29 }
  0xfe   : > { %p530_p6 = pnand %p529_p5, %p671_p9 }
  0xff   : > { %p535_p13 = por %p534_p4, %p533_p10 }
 0x100   : > { %p531_p7 = pneg %p530_p6 }
 0x102   : > { %p536_p8 = pnand %p535_p13, %p531_p7 }
 0x104   : > { %539 = shalt.err (!%p536_p8)
}
 0x105   : > { %423 = dma.vmem_to_hbm [thread:$0]  (%p671_p9), %s320_s9, 128, %s317_s18, %s303_s19  }
 0x106 PF: > { %s331_s24 = sand.u32 1, %s574_s12   ;;  %p770_p11 = scmp.ne.s32.totalorder %s768_s27, 0 }
 0x107   : > { %p771_p12 = scmp.ge.s32.totalorder %s594_s17, 2  ;;  %s332_s7 = scalar_lea.sflag [#allocation4], %s331_s24 }
 0x109   : > { %p430_p0 = pnand %p771_p12, %p770_p11 }
 0x10b   : > { %p431_p1 = pneg %p430_p0 }
 0x10d   : > { %569 = dma.done.wait (%p431_p1), %s332_s7, 128  }
 0x10e   : > { %571 = vsyncadd (%p431_p1), %s332_s7, 4294967168  ;;  %s19_s17 = sadd.s32 1, %s594_s17   ;;  %s772_s12 = smov %s578_s13 }
 0x10f   : > { %p16_p2 = scmp.ge.s32.totalorder %s19_s17, 4   ;;  %s773_s13 = smov %s582_s14 }
 0x110   : > { %s774_s14 = smov %s676_s26  ;;  %s775_s15 = smov %s590_s16 }
 0x111   : > { %s776_s16 = smov %s778_s20  ;;  %18 = sbr.rel (!%p16_p2) target bundleno = 6 (0x6), region = 77 }
 0x116   :  { %337 = vsyncpa [#allocation3], 1 }
 0x117   :  { %339 = vsyncpa [#allocation3 + $0x1], 1 }
 0x118   :  { %340 = vsyncpa [#allocation4], 1 }
 0x119   :  { %342 = vsyncpa [#allocation4 + $0x1], 1 }

</bundles_post_ra>
